<compile_context>
chip_gen: v7x
topology: tpu7x:2x2x1
jax: 0.10.0
libtpu: 0.0.40
codegen_flags: <defaults>
</compile_context>

<pallas_src>
import functools

import jax
import jax.numpy as jnp
from jax import lax
from jax.experimental import pallas as pl
from jax.experimental.pallas import tpu as pltpu


def _round_up(x, m):
    return ((x + m - 1) // m) * m


def _ceil_div(a, b):
    return -(-a // b)


def _proj_layernorm_kernel(p_ref, w_ref, a_ref, prm_ref, o_ref):
    """Packed projection + LayerNorm.

    p_ref:   (TMr, r*K)  bf16  -- r original rows packed per stored row
    w_ref:   (r*K, r*E)  bf16  -- kron(I_r, W): block-diagonal projection
    a_ref:   (r*E, r*E)  f32   -- kron(I_r, 11^T / E): segment-mean operator
    prm_ref: (3,   r*E)  f32   -- [bias; gamma; beta], each tiled r times
    o_ref:   (TMr, r*E)  out dtype (bf16)
    """
    x = jnp.dot(p_ref[...], w_ref[...], preferred_element_type=jnp.float32)
    x = x + prm_ref[0:1, :]                               # conv bias

    # Per-segment (length-E) LayerNorm without any in-kernel reshape: the A
    # matmul broadcasts each segment's mean / E[x^2] across that segment.
    mean = jnp.dot(x, a_ref[...], preferred_element_type=jnp.float32)
    ex2 = jnp.dot(x * x, a_ref[...], preferred_element_type=jnp.float32)
    var = jnp.maximum(ex2 - mean * mean, 0.0)             # clamp cancellation
    scale = lax.rsqrt(var + 1e-5) * prm_ref[1:2, :]       # gamma folded in
    o_ref[...] = ((x - mean) * scale + prm_ref[2:3, :]).astype(o_ref.dtype)


def _im2col_k_last(x_nchw, kh, kw, stride, pad_h, pad_w):
    """Overlapping patches with K as the LAST axis; K order = (kh, kw, c)."""
    B, C, H, W = x_nchw.shape
    # bf16 right after the NHWC transpose: the padded image, the kh*kw concat
    # and the materialized (M, K) patches array are all half-width in HBM.
    x = jnp.transpose(x_nchw, (0, 2, 3, 1)).astype(jnp.bfloat16)
    xp = jnp.pad(x, ((0, 0), (pad_h, pad_h), (pad_w, pad_w), (0, 0)))
    Ho = (H + 2 * pad_h - kh) // stride + 1
    Wo = (W + 2 * pad_w - kw) // stride + 1
    parts = []
    for i in range(kh):
        for j in range(kw):
            parts.append(
                xp[:, i:i + stride * Ho:stride, j:j + stride * Wo:stride, :])
    patches = jnp.concatenate(parts, axis=-1)             # (B, Ho, Wo, kh*kw*C)
    return patches.reshape(B * Ho * Wo, kh * kw * C), Ho, Wo


@functools.partial(jax.jit, static_argnames=("stride", "out_dtype"))
def overlap_patch_embed(x, conv_w, conv_b, ln_gamma, ln_beta, *, stride,
                        out_dtype=jnp.bfloat16):
    """x: (B, C, H, W) NCHW.  conv_w: (E, C, kh, kw).  Returns (out, Ho, Wo)."""
    B, C, H, W = x.shape
    E, _, kh, kw = conv_w.shape
    pad_h, pad_w = kh // 2, kw // 2

    # TODO(synk): biggest remaining win is in-kernel patch extraction (padded
    # NHWC image kept in HBM via memory_space=pl.ANY + per-row-band
    # pltpu.make_async_copy), cutting the ~3x im2col HBM round trip; kept as
    # XLA glue here for robustness.
    patches, Ho, Wo = _im2col_k_last(x, kh, kw, stride, pad_h, pad_w)  # (M, K)
    M, K = patches.shape

    # Lane-pack factor: pack r consecutive output rows into one stored row so
    # the stored last dim is r*E = 128 lanes (unmasked vst) when E < 128.
    r = 128 // E if (E < 128 and 128 % E == 0) else 1
    rK, rE = r * K, r * E
    out_itemsize = jnp.dtype(out_dtype).itemsize

    # Row tile: target 1024 rows, capped by physical VMEM (v7x has 64 MiB),
    # kept a multiple of 16*r (bf16 sublane packing of the packed view), and
    # shrunk so the grid has >= 2 steps when there is enough work (so
    # "parallel" can spread rows over v7x's two TensorCores).
    row_align = 16 * r
    try:
        phys_vmem = int(pltpu.get_tpu_info().vmem_capacity_bytes)
    except Exception:  # no TPU info -> assume the smallest VMEM (v7x, 64 MiB)
        phys_vmem = 64 << 20
    resident_bytes = 2 * (rK * rE * 2 + rE * rE * 4 + 3 * rE * 4)
    tile_budget = max(1 << 20, int(phys_vmem * 0.6) - resident_bytes)
    per_row_bytes = 2 * K * 2 + 2 * E * out_itemsize + 4 * E * 4
    tm_cap = max(row_align,
                 (tile_budget // per_row_bytes) // row_align * row_align)

    TM = min(1024, tm_cap, _round_up(M, row_align))
    TM = max(row_align, (TM // row_align) * row_align)
    M_pad = _round_up(M, TM)
    if M_pad // TM < 2 and M > row_align:          # balance v7x's 2 TCs
        TM = min(TM, _round_up(_ceil_div(M, 2), row_align))
        M_pad = _round_up(M, TM)
    TMr = TM // r
    Mp = M_pad // r                                # packed row count

    # Row-pad only (no K padding -> no dead DMA columns), then view r
    # consecutive rows as one packed row (free row-major reshape).
    patches = jnp.pad(patches, ((0, M_pad - M), (0, 0)))
    p_packed = patches.reshape(Mp, rK)

    # Weight flattened in the same (kh, kw, c) order; block-diagonal so the
    # packed matmul yields [row_0 @ W | ... | row_{r-1} @ W] per stored row.
    w2d = conv_w.transpose(0, 2, 3, 1).reshape(E, K).T.astype(jnp.float32)
    w_bd = jnp.kron(jnp.eye(r, dtype=jnp.float32), w2d).astype(jnp.bfloat16)

    # Segment-mean operator and stacked (bias, gamma, beta) parameters.
    a_avg = jnp.kron(jnp.eye(r, dtype=jnp.float32),
                     jnp.full((E, E), 1.0 / E, dtype=jnp.float32))
    params = jnp.stack([
        jnp.tile(conv_b.astype(jnp.float32), r),
        jnp.tile(ln_gamma.astype(jnp.float32), r),
        jnp.tile(ln_beta.astype(jnp.float32), r),
    ])                                             # (3, rE) f32

    grid = (Mp // TMr,)

    vmem_limit = int(
        2 * (TMr * rK * 2 + TMr * rE * out_itemsize)   # dbuf patches + out
        + resident_bytes                               # resident operands
        + 6 * TMr * rE * 4                             # f32 temporaries
        + (8 << 20))
    vmem_limit = min(vmem_limit, int(phys_vmem * 0.9))

    cost = pl.CostEstimate(
        flops=2 * Mp * rK * rE + 4 * Mp * rE * rE,
        transcendentals=Mp * rE,
        bytes_accessed=(Mp * rK * 2 + rK * rE * 2 + rE * rE * 4 + 3 * rE * 4
                        + Mp * rE * out_itemsize),
    )

    # TODO(synk): pipeline_mode=pl.Buffered(1) on the three resident operands
    # would drop their pointless double buffers (small VMEM saving on v7x).
    # TODO(synk): on v7x an fp8 patch stream (per-tile scale, f32 accumulate)
    # would halve the dominant DMA stream again; needs an accuracy budget.
    out_packed = pl.pallas_call(
        _proj_layernorm_kernel,
        out_shape=jax.ShapeDtypeStruct((Mp, rE), out_dtype),
        grid=grid,
        in_specs=[
            pl.BlockSpec((TMr, rK), lambda i: (i, 0)),   # row-tiled patches
            pl.BlockSpec((rK, rE), lambda i: (0, 0)),    # resident weight
            pl.BlockSpec((rE, rE), lambda i: (0, 0)),    # segment-mean op
            pl.BlockSpec((3, rE), lambda i: (0, 0)),     # bias/gamma/beta
        ],
        out_specs=pl.BlockSpec((TMr, rE), lambda i: (i, 0)),
        compiler_params=pltpu.CompilerParams(
            dimension_semantics=("parallel",),   # rows independent; v7x 2 TCs
            vmem_limit_bytes=vmem_limit,
        ),
        cost_estimate=cost,
    )(p_packed, w_bd, a_avg, params)

    # Unpack lanes -> rows (free row-major reshape), drop M padding (padded
    # rows come out as beta, so this slice must stay), restore (B, N, E).
    out = out_packed.reshape(M_pad, E)[:M].reshape(B, Ho * Wo, E)
    return out, Ho, Wo


def _reference(x, conv_w, conv_b, ln_gamma, ln_beta, stride):
    """Pure-JAX f32 reference (conv + layernorm) for correctness checking."""
    E, C, kh, kw = conv_w.shape
    y = jax.lax.conv_general_dilated(
        x.astype(jnp.float32), conv_w.astype(jnp.float32),
        window_strides=(stride, stride),
        padding=((kh // 2, kh // 2), (kw // 2, kw // 2)),
        dimension_numbers=("NCHW", "OIHW", "NCHW"),
    ) + conv_b.reshape(1, E, 1, 1)
    B, _, Ho, Wo = y.shape
    y = y.reshape(B, E, Ho * Wo).transpose(0, 2, 1)   # (B, N, E)
    mean = jnp.mean(y, axis=-1, keepdims=True)
    var = jnp.mean(jnp.square(y - mean), axis=-1, keepdims=True)
    y = (y - mean) * jax.lax.rsqrt(var + 1e-5) * ln_gamma + ln_beta
    return y, Ho, Wo


if __name__ == "__main__":
    # Small, module-consistent shapes: img_size=16, patch_size=7, stride=4,
    # in_channels=4, embedding_dim=32, batch=2.
    B, C, HW = 2, 4, 16
    patch, stride, E = 7, 4, 32

    key = jax.random.PRNGKey(0)
    k_x, k_w, k_b, k_g, k_bt = jax.random.split(key, 5)
    x = jax.random.normal(k_x, (B, C, HW, HW), dtype=jnp.float32)
    conv_w = jax.random.normal(k_w, (E, C, patch, patch), dtype=jnp.float32) * 0.05
    conv_b = jax.random.normal(k_b, (E,), dtype=jnp.float32) * 0.05
    ln_gamma = 1.0 + 0.1 * jax.random.normal(k_g, (E,), dtype=jnp.float32)
    ln_beta = 0.1 * jax.random.normal(k_bt, (E,), dtype=jnp.float32)

    out, H, W = overlap_patch_embed(x, conv_w, conv_b, ln_gamma, ln_beta,
                                    stride=stride, out_dtype=jnp.bfloat16)
    out = jax.block_until_ready(out)

    ref, Hr, Wr = _reference(x, conv_w, conv_b, ln_gamma, ln_beta, stride)
    assert (H, W) == (Hr, Wr) == (HW // stride, HW // stride)
    assert out.shape == (B, H * W, E)
    assert out.dtype == jnp.bfloat16
    # bf16 patch/weight/output stream (f32 MXU accumulation + f32 LayerNorm)
    # vs a pure-f32 reference -> loose tolerance is expected and intentional.
    assert jnp.allclose(out.astype(jnp.float32), ref, atol=5e-2, rtol=5e-2)

    print("KERNEL_OK")
</pallas_src>

<mosaic_0001>
module attributes {stable_mosaic.version = 11 : i64} {
  func.func @_proj_layernorm_kernel(%arg0: i32, %arg1: memref<16x784xbf16, #tpu.memory_space<vmem>>, %arg2: memref<784x128xbf16, #tpu.memory_space<vmem>>, %arg3: memref<128x128xf32, #tpu.memory_space<vmem>>, %arg4: memref<3x128xf32, #tpu.memory_space<vmem>>, %arg5: memref<16x128xbf16, #tpu.memory_space<vmem>>) attributes {dimension_semantics = [#tpu.dimension_semantics<parallel>], iteration_bounds = array<i64: 1>, scalar_prefetch = 0 : i64, scratch_operands = 0 : i64, tpu.core_type = #tpu.core_type<tc>, window_params = [{transform_indices = @transform_0, window_bounds = array<i64: 16, 784>}, {pipeline_mode = #tpu.pipeline_mode<synchronous>, transform_indices = @transform_1, window_bounds = array<i64: 784, 128>}, {pipeline_mode = #tpu.pipeline_mode<synchronous>, transform_indices = @transform_2, window_bounds = array<i64: 128, 128>}, {pipeline_mode = #tpu.pipeline_mode<synchronous>, transform_indices = @transform_3, window_bounds = array<i64: 3, 128>}, {transform_indices = @transform_4, window_bounds = array<i64: 16, 128>}]} {
    %c0 = arith.constant 0 : index
    %c0_0 = arith.constant 0 : index
    %0 = vector.load %arg1[%c0, %c0_0] : memref<16x784xbf16, #tpu.memory_space<vmem>>, vector<16x784xbf16>
    %c0_1 = arith.constant 0 : index
    %c0_2 = arith.constant 0 : index
    %1 = vector.load %arg2[%c0_1, %c0_2] : memref<784x128xbf16, #tpu.memory_space<vmem>>, vector<784x128xbf16>
    %cst = arith.constant dense<0.000000e+00> : vector<16x128xf32>
    %2 = tpu.matmul %0, %1, %cst {dimension_numbers = #tpu.dot_dimension_numbers<[1], [0], [0], [1], [0, 0, 1, 1], [], []>} : vector<16x784xbf16>, vector<784x128xbf16>, vector<16x128xf32> -> vector<16x128xf32>
    %c0_3 = arith.constant 0 : index
    %c0_4 = arith.constant 0 : index
    %3 = vector.load %arg4[%c0_3, %c0_4] : memref<3x128xf32, #tpu.memory_space<vmem>>, vector<1x128xf32>
    %4 = vector.broadcast %3 : vector<1x128xf32> to vector<16x128xf32>
    %5 = arith.addf %2, %4 : vector<16x128xf32>
    %c0_5 = arith.constant 0 : index
    %c0_6 = arith.constant 0 : index
    %6 = vector.load %arg3[%c0_5, %c0_6] : memref<128x128xf32, #tpu.memory_space<vmem>>, vector<128x128xf32>
    %cst_7 = arith.constant dense<0.000000e+00> : vector<16x128xf32>
    %7 = tpu.matmul %5, %6, %cst_7 {dimension_numbers = #tpu.dot_dimension_numbers<[1], [0], [0], [1], [0, 0, 1, 1], [], []>} : vector<16x128xf32>, vector<128x128xf32>, vector<16x128xf32> -> vector<16x128xf32>
    %8 = arith.mulf %5, %5 : vector<16x128xf32>
    %c0_8 = arith.constant 0 : index
    %c0_9 = arith.constant 0 : index
    %9 = vector.load %arg3[%c0_8, %c0_9] : memref<128x128xf32, #tpu.memory_space<vmem>>, vector<128x128xf32>
    %cst_10 = arith.constant dense<0.000000e+00> : vector<16x128xf32>
    %10 = tpu.matmul %8, %9, %cst_10 {dimension_numbers = #tpu.dot_dimension_numbers<[1], [0], [0], [1], [0, 0, 1, 1], [], []>} : vector<16x128xf32>, vector<128x128xf32>, vector<16x128xf32> -> vector<16x128xf32>
    %11 = arith.mulf %7, %7 : vector<16x128xf32>
    %12 = arith.subf %10, %11 : vector<16x128xf32>
    %cst_11 = arith.constant 0.000000e+00 : f32
    %13 = vector.broadcast %cst_11 : f32 to vector<16x128xf32>
    %14 = arith.maximumf %12, %13 : vector<16x128xf32>
    %cst_12 = arith.constant 9.99999974E-6 : f32
    %15 = vector.broadcast %cst_12 : f32 to vector<16x128xf32>
    %16 = arith.addf %14, %15 : vector<16x128xf32>
    %17 = math.rsqrt %16 : vector<16x128xf32>
    %c1 = arith.constant 1 : index
    %c0_13 = arith.constant 0 : index
    %18 = vector.load %arg4[%c1, %c0_13] : memref<3x128xf32, #tpu.memory_space<vmem>>, vector<1x128xf32>
    %19 = vector.broadcast %18 : vector<1x128xf32> to vector<16x128xf32>
    %20 = arith.mulf %17, %19 : vector<16x128xf32>
    %21 = arith.subf %5, %7 : vector<16x128xf32>
    %22 = arith.mulf %21, %20 : vector<16x128xf32>
    %c2 = arith.constant 2 : index
    %c0_14 = arith.constant 0 : index
    %23 = vector.load %arg4[%c2, %c0_14] : memref<3x128xf32, #tpu.memory_space<vmem>>, vector<1x128xf32>
    %24 = vector.broadcast %23 : vector<1x128xf32> to vector<16x128xf32>
    %25 = arith.addf %22, %24 : vector<16x128xf32>
    %26 = arith.truncf %25 : vector<16x128xf32> to vector<16x128xbf16>
    %c0_15 = arith.constant 0 : index
    %c0_16 = arith.constant 0 : index
    %27 = vector.load %arg5[%c0_15, %c0_16] : memref<16x128xbf16, #tpu.memory_space<vmem>>, vector<16x128xbf16>
    tpu.vector_store %arg5[%c0_15, %c0_16], %26 {strides = array<i32>} : memref<16x128xbf16, #tpu.memory_space<vmem>>, vector<16x128xbf16>,
    return
  }
  func.func @transform_0(%arg0: i32) -> (i32, i32) {
    %c0_i32 = arith.constant 0 : i32
    %c0_i32_0 = arith.constant 0 : i32
    return %arg0, %c0_i32 : i32, i32
  }
  func.func @transform_1(%arg0: i32) -> (i32, i32) {
    %c0_i32 = arith.constant 0 : i32
    %c0_i32_0 = arith.constant 0 : i32
    %c0_i32_1 = arith.constant 0 : i32
    return %c0_i32, %c0_i32_0 : i32, i32
  }
  func.func @transform_2(%arg0: i32) -> (i32, i32) {
    %c0_i32 = arith.constant 0 : i32
    %c0_i32_0 = arith.constant 0 : i32
    %c0_i32_1 = arith.constant 0 : i32
    return %c0_i32, %c0_i32_0 : i32, i32
  }
  func.func @transform_3(%arg0: i32) -> (i32, i32) {
    %c0_i32 = arith.constant 0 : i32
    %c0_i32_0 = arith.constant 0 : i32
    %c0_i32_1 = arith.constant 0 : i32
    return %c0_i32, %c0_i32_0 : i32, i32
  }
  func.func @transform_4(%arg0: i32) -> (i32, i32) {
    %c0_i32 = arith.constant 0 : i32
    %c0_i32_0 = arith.constant 0 : i32
    return %arg0, %c0_i32 : i32, i32
  }
}

</mosaic_0001>

<bundles_post_ra>
// kernel: tile.18
= control target key start
LH: loop header
LB: loop body
LE: loop exit
PB: predicated region body
PF: predicated region fallthrough
CT: control target
= control target key end

     0   :  { %s22_s0 = inlined_call_operand.vmem [shape: f32[32], index: 0, kind: input, shape index: {}]   ;;  %s23_s1 = inlined_call_operand.vmem [shape: f32[4,32], index: 1, kind: output, shape index: {}]  }
   0x1   :  { %v4_v0 = vld [vmem:[%s22_s0] ss:$0 sm:$0xff] }
   0x2   :  { %5 = vst [vmem:[%s23_s1] sm:$0xf] %v4_v0 }

// kernel: tile.27
= control target key start
LH: loop header
LB: loop body
LE: loop exit
PB: predicated region body
PF: predicated region fallthrough
CT: control target
= control target key end

     0   :  { %vm7_vm0 = vcmask 261120   ;;  %s37_s8 = smov 32   ;;  %s38_s9 = smov 64   ;;  %vm13_vm1 = vcmask 1048320   ;;  %vm19_vm2 = vcmask 785920   ;;  %vm25_vm3 = vcmask 523520   ;;  %s55_s0 = inlined_call_operand.vmem [shape: f32[4,32], index: 0, kind: input, shape index: {}]   ;;  %s56_s1 = inlined_call_operand.vmem [shape: f32[1,128], index: 1, kind: output, shape index: {}]  }
   0x1   :  { %v4_v0 = vld [vmem:[%s55_s0] sm:$0xf]  ;;  %s36_s0 = smov 96  }
   0x2   :  { %5 = vst [vmem:[#allocation1] sm:$0xf] %v4_v0 }
   0x9   :  { %v10_v1 = vld [vmem:[#allocation1 + $0x3] sm:$0x1]   ;;  %v22_v2 = vld [vmem:[#allocation1 + $0x1] sm:$0x1]   ;;  %v6_v3 = vld [vmem:[#allocation1] sm:$0x1]  }
   0xa   :  { %11 = vrot.lane.b32.xlu0 %v10_v1, %s36_s0  ;;  %23 = vrot.lane.b32.xlu1 %v22_v2, %s37_s8  ;;  %v16_v4 = vld [vmem:[#allocation1 + $0x2] sm:$0x1]   ;;  %8 = vst.msk [vmem:[#allocation0] sm:$0x1] %vm7_vm0, %v6_v3  }
   0xe   :  { %17 = vrot.lane.b32.xlu0 %v16_v4, %s38_s9 }
  0x7c   :  { %v12_v5 = vpop.permute.xlu0 %11   ;;  %v24_v6 = vpop.permute.xlu1 %23  }
  0x7d   :  { %14 = vst.msk [vmem:[#allocation0] sm:$0x1] %vm13_vm1, %v12_v5  }
  0x80   :  { %v18_v7 = vpop.permute.xlu0 %17  }
  0x81   :  { %20 = vst.msk [vmem:[#allocation0] sm:$0x1] %vm19_vm2, %v18_v7  }
  0x82   :  { %26 = vst.msk [vmem:[#allocation0] sm:$0x1] %vm25_vm3, %v24_v6  }
  0x89   :  { %v30_v8 = vld [vmem:[#allocation0] sm:$0x1] }
  0x8a   :  { %32 = vst [vmem:[%s56_s1] sm:$0x1] %v30_v8 }

// kernel: overlap_patch_embed.1
= control target key start
LH: loop header
LB: loop body
LE: loop exit
PB: predicated region body
PF: predicated region fallthrough
CT: control target
= control target key end

     0   :  { %v1214_v38 = vmov 0.0   ;;  %vm1215_vm0 = vmmov 0   ;;  %vm458_vm1 = vcmask 130048   ;;  %s1469_s1 = inlined_call_operand.vmem [shape: bf16[784,128], index: 1, kind: input, shape index: {}]   ;;  %s1470_s0 = inlined_call_operand.vmem [shape: bf16[16,784], index: 0, kind: input, shape index: {}]   ;;  %s1471_s2 = inlined_call_operand.vmem [shape: f32[128,128], index: 2, kind: input, shape index: {}]   ;;  %s1472_s3 = inlined_call_operand.vmem [shape: f32[3,128], index: 3, kind: input, shape index: {}]   ;;  %s1473_s4 = inlined_call_operand.vmem [shape: bf16[16,128], index: 4, kind: output, shape index: {}]  }
   0x1   :  { %v1151_v0 = vld [vmem:[%s1469_s1 + $0x40] sm:$0xff]   ;;  %v1155_v4 = vld [vmem:[%s1469_s1 + $0x48] sm:$0xff]   ;;  %v1159_v8 = vld [vmem:[%s1469_s1 + $0x50] sm:$0xff]  }
   0x2   :  { %v1152_v1 = vld [vmem:[%s1469_s1] sm:$0xff]   ;;  %905 = vmatprep.subr.bf16.mxu0 %v1151_v0  ;;  %v1156_v5 = vld [vmem:[%s1469_s1 + $0x8] sm:$0xff]   ;;  %v1160_v9 = vld [vmem:[%s1469_s1 + $0x10] sm:$0xff]  }
   0x3   :  { %v1153_v2 = vld [vmem:[%s1469_s1 + $0xc0] sm:$0xff]   ;;  %906 = vmatpush3.bf16.msra.mxu0 %v1152_v1  ;;  %v1157_v6 = vld [vmem:[%s1469_s1 + $0xc8] sm:$0xff]   ;;  %v1161_v10 = vld [vmem:[%s1469_s1 + $0xd0] sm:$0xff]  }
   0x4   :  { %v1154_v3 = vld [vmem:[%s1469_s1 + $0x80] sm:$0xff]   ;;  %927 = vmatprep.subr.bf16.mxu1 %v1153_v2  ;;  %907 = vmatprep.subr.bf16.mxu0 %v1155_v4  ;;  %v1158_v7 = vld [vmem:[%s1469_s1 + $0x88] sm:$0xff]   ;;  %v1162_v11 = vld [vmem:[%s1469_s1 + $0x90] sm:$0xff]  }
   0x5   :  { %928 = vmatpush3.bf16.msra.mxu1 %v1154_v3  ;;  %v1163_v12 = vld [vmem:[%s1469_s1 + $0x58] sm:$0xff]   ;;  %v1167_v16 = vld [vmem:[%s1469_s1 + $0x60] sm:$0xff]   ;;  %v1171_v20 = vld [vmem:[%s1469_s1 + $0x68] sm:$0xff]  }
   0x6   :  { %929 = vmatprep.subr.bf16.mxu1 %v1157_v6  ;;  %v1164_v13 = vld [vmem:[%s1469_s1 + $0x18] sm:$0xff]   ;;  %v1168_v17 = vld [vmem:[%s1469_s1 + $0x20] sm:$0xff]   ;;  %v1172_v21 = vld [vmem:[%s1469_s1 + $0x28] sm:$0xff]  }
   0x7   :  { %908 = vmatpush3.bf16.msra.mxu0 %v1156_v5  ;;  %v1165_v14 = vld [vmem:[%s1469_s1 + $0xd8] sm:$0xff]   ;;  %v1169_v18 = vld [vmem:[%s1469_s1 + $0xe0] sm:$0xff]   ;;  %v1173_v22 = vld [vmem:[%s1469_s1 + $0xe8] sm:$0xff]  }
   0x8   :  { %909 = vmatprep.subr.bf16.mxu0 %v1159_v8  ;;  %v1166_v15 = vld [vmem:[%s1469_s1 + $0x98] sm:$0xff]   ;;  %v1170_v19 = vld [vmem:[%s1469_s1 + $0xa0] sm:$0xff]   ;;  %v1174_v23 = vld [vmem:[%s1469_s1 + $0xa8] sm:$0xff]  }
   0x9   :  { %930 = vmatpush3.bf16.msra.mxu1 %v1158_v7  ;;  %v1175_v24 = vld [vmem:[%s1469_s1 + $0x70] sm:$0xff]   ;;  %v1179_v28 = vld [vmem:[%s1469_s1 + $0x78] sm:$0xff]   ;;  %v1184_v32 = vld [vmem:[%s1470_s0 + $0x4] ss:$28 sps:$4 sm:$0xff]  }
   0xa   :  { %931 = vmatprep.subr.bf16.mxu1 %v1161_v10  ;;  %v1176_v25 = vld [vmem:[%s1469_s1 + $0x30] sm:$0xff]   ;;  %v1180_v29 = vld [vmem:[%s1469_s1 + $0x38] sm:$0xff]   ;;  %494 = vmatprep.mubr.bf16.mxu0 %v1184_v32  ;;  %v1186_v34 = vld [vmem:[%s1469_s1 + $0x140] sm:$0xff]  }
   0xb   :  { %910 = vmatpush3.bf16.msra.mxu0 %v1160_v9  ;;  %v1177_v26 = vld [vmem:[%s1469_s1 + $0xf0] sm:$0xff]   ;;  %v1181_v30 = vld [vmem:[%s1469_s1 + $0xf8] sm:$0xff]   ;;  %v1187_v35 = vld [vmem:[%s1470_s0 + $0x8] ss:$28 sps:$4 sm:$0xff]  }
   0xc   :  { %911 = vmatprep.subr.bf16.mxu0 %v1163_v12  ;;  %v1178_v27 = vld [vmem:[%s1469_s1 + $0xb0] sm:$0xff]   ;;  %v1182_v31 = vld [vmem:[%s1470_s0] ss:$28 sps:$4 sm:$0xff]   ;;  %v1189_v36 = vld [vmem:[%s1470_s0 + $0xc] ss:$28 sps:$4 sm:$0xff]  }
   0xd   :  { %932 = vmatpush3.bf16.msra.mxu1 %v1162_v11  ;;  %v1185_v33 = vld [vmem:[%s1469_s1 + $0xb8] sm:$0xff]   ;;  %v1190_v37 = vld [vmem:[%s1469_s1 + $0x100] sm:$0xff]   ;;  %535 = vmatprep.mubr.bf16.mxu1 %v1189_v36  ;;  %v1191_v39 = vld [vmem:[%s1469_s1 + $0x148] sm:$0xff]  }
   0xe   :  { %933 = vmatprep.subr.bf16.mxu1 %v1165_v14  ;;  %v1192_v40 = vld [vmem:[%s1469_s1 + $0x108] sm:$0xff]   ;;  %v1193_v41 = vld [vmem:[%s1469_s1 + $0x150] sm:$0xff]   ;;  %v1195_v43 = vld [vmem:[%s1469_s1 + $0x158] sm:$0xff]  }
   0xf   :  { %912 = vmatpush3.bf16.msra.mxu0 %v1164_v13  ;;  %v1194_v42 = vld [vmem:[%s1469_s1 + $0x110] sm:$0xff]   ;;  %v1196_v44 = vld [vmem:[%s1469_s1 + $0x118] sm:$0xff]   ;;  %v1197_v45 = vld [vmem:[%s1469_s1 + $0x160] sm:$0xff]  }
  0x10   :  { %913 = vmatprep.subr.bf16.mxu0 %v1167_v16  ;;  %v1198_v46 = vld [vmem:[%s1469_s1 + $0x120] sm:$0xff]   ;;  %v1199_v47 = vld [vmem:[%s1469_s1 + $0x168] sm:$0xff]   ;;  %v1208_v49 = vld [vmem:[%s1470_s0 + $0x14] ss:$28 sps:$4 sm:$0xff]  }
  0x11   :  { %934 = vmatpush3.bf16.msra.mxu1 %v1166_v15  ;;  %v1205_v48 = vld [vmem:[%s1469_s1 + $0x180] sm:$0xff]   ;;  %v1209_v50 = vld [vmem:[%s1470_s0 + $0x18] ss:$28 sps:$4 sm:$0xff]   ;;  %v1200_v51 = vld [vmem:[%s1469_s1 + $0x128] sm:$0xff]  }
  0x12   :  { %935 = vmatprep.subr.bf16.mxu1 %v1169_v18  ;;  %v1201_v52 = vld [vmem:[%s1469_s1 + $0x170] sm:$0xff]   ;;  %v1203_v54 = vld [vmem:[%s1469_s1 + $0x178] sm:$0xff]   ;;  %v626_v57 = vld [vmem:[%s1471_s2] sm:$0xff] }
  0x13   :  { %914 = vmatpush3.bf16.msra.mxu0 %v1168_v17  ;;  %v1202_v53 = vld [vmem:[%s1469_s1 + $0x130] sm:$0xff]   ;;  %v1204_v55 = vld [vmem:[%s1469_s1 + $0x138] sm:$0xff]   ;;  %v627_v58 = vld [vmem:[%s1471_s2 + $0x8] sm:$0xff] }
  0x14   :  { %915 = vmatprep.subr.bf16.mxu0 %v1171_v20  ;;  %v1206_v56 = vld [vmem:[%s1470_s0 + $0x10] ss:$28 sps:$4 sm:$0xff]   ;;  %v1085_v60 = vpack.c.bf16 %v627_v58, %v626_v57  ;;  %v629_v61 = vld [vmem:[%s1471_s2 + $0x18] sm:$0xff]  ;;  %v630_v63 = vld [vmem:[%s1471_s2 + $0x20] sm:$0xff] }
  0x15   :  { %936 = vmatpush3.bf16.msra.mxu1 %v1170_v19  ;;  %v628_v59 = vld [vmem:[%s1471_s2 + $0x10] sm:$0xff]  ;;  %v631_v0 = vld [vmem:[%s1471_s2 + $0x28] sm:$0xff]  ;;  %v633_v3 = vld [vmem:[%s1471_s2 + $0x38] sm:$0xff] }
  0x16   :  { %937 = vmatprep.subr.bf16.mxu1 %v1173_v22  ;;  %v1089_v62 = vpack.c.bf16 %v629_v61, %v628_v59  ;;  %v1093_v1 = vpack.c.bf16 %v631_v0, %v630_v63  ;;  %v632_v2 = vld [vmem:[%s1471_s2 + $0x30] sm:$0xff]  ;;  %v634_v5 = vld [vmem:[%s1471_s2 + $0x40] sm:$0xff]  ;;  %v635_v6 = vld [vmem:[%s1471_s2 + $0x48] sm:$0xff] }
  0x17   :  { %916 = vmatpush3.bf16.msra.mxu0 %v1172_v21  ;;  %v1097_v4 = vpack.c.bf16 %v633_v3, %v632_v2  ;;  %v1101_v7 = vpack.c.bf16 %v635_v6, %v634_v5  ;;  %v636_v8 = vld [vmem:[%s1471_s2 + $0x50] sm:$0xff]  ;;  %v637_v9 = vld [vmem:[%s1471_s2 + $0x58] sm:$0xff]  ;;  %v638_v11 = vld [vmem:[%s1471_s2 + $0x60] sm:$0xff] }
  0x18   :  { %917 = vmatprep.subr.bf16.mxu0 %v1175_v24  ;;  %v1105_v10 = vpack.c.bf16 %v637_v9, %v636_v8  ;;  %v639_v12 = vld [vmem:[%s1471_s2 + $0x68] sm:$0xff]  ;;  %v640_v14 = vld [vmem:[%s1471_s2 + $0x70] sm:$0xff]  ;;  %v641_v15 = vld [vmem:[%s1471_s2 + $0x78] sm:$0xff] }
  0x19   :  { %938 = vmatpush3.bf16.msra.mxu1 %v1174_v23  ;;  %v1109_v13 = vpack.c.bf16 %v639_v12, %v638_v11  ;;  %v1113_v16 = vpack.c.bf16 %v641_v15, %v640_v14  ;;  %v836_v18 = vld [vmem:[%s1472_s3] ss:$0 sm:$0xff]  ;;  %v895_v3 = vld [vmem:[%s1472_s3 + $0x2] ss:$0 sm:$0xff] }
  0x1a   :  { %939 = vmatprep.subr.bf16.mxu1 %v1177_v26 }
  0x1b   :  { %918 = vmatpush3.bf16.msra.mxu0 %v1176_v25 }
  0x1c   :  { %919 = vmatprep.subr.bf16.mxu0 %v1179_v28 }
  0x1d   :  { %940 = vmatpush3.bf16.msra.mxu1 %v1178_v27 }
  0x1e   :  { %941 = vmatprep.subr.bf16.mxu1 %v1181_v30 }
  0x1f   :  { %920 = vmatpush3.bf16.msra.mxu0 %v1180_v29 }
  0x20   :  { %949 = vmatprep.subr.bf16.mxu0 %v1186_v34 }
  0x21   :  { %942 = vmatpush3.bf16.msra.mxu1 %v1185_v33 }
  0x22   :  { %495 = vmatmul.mubr.bf16.vlgmr.msra.gmra.mrb[0].mxu0 %v1182_v31  ;;  %1009 = vmatprep.subr.bf16.mxu1 %v1214_v38 }
  0x23   :  { %950 = vmatpush3.bf16.msra.mxu0 %v1190_v37  ;;  %576 = vmatprep.mubr.bf16.mxu0 %v1208_v49 }
  0x24   :  { %536 = vmatmul.mubr.bf16.vlgmr.msra.gmra.mrb[0].mxu1 %v1187_v35  ;;  %951 = vmatprep.subr.bf16.mxu0 %v1191_v39 }
  0x25   :  { %1011 = vmatprep.mubr.msk.bf16.mxu1 %vm1215_vm0, %v1214_v38  ;;  %1010 = vmatpush3.bf16.msra.mxu1 %v1205_v48 }
  0x26   :  { %1086 = vmatprep.subr.bf16.mxu1 %v1085_v60 }
  0x27   :  { %952 = vmatpush3.bf16.msra.mxu0 %v1192_v40 }
  0x28   :  { %953 = vmatprep.subr.bf16.mxu0 %v1193_v41 }
  0x2b   :  { %954 = vmatpush3.bf16.msra.mxu0 %v1194_v42 }
  0x2c   :  { %955 = vmatprep.subr.bf16.mxu0 %v1195_v43  ;;  %1012 = vmatmul.mubr.msk.bf16.vlgmr.msra.gmra.mrb[4].mxu1 %vm458_vm1, %v1209_v50 }
  0x2d   :  { %1088 = vmatpush3.bf16.msra.mxu1 %v1085_v60 }
  0x2e   :  { %1090 = vmatprep.subr.bf16.mxu1 %v1089_v62 }
  0x2f   :  { %956 = vmatpush3.bf16.msra.mxu0 %v1196_v44 }
  0x30   :  { %957 = vmatprep.subr.bf16.mxu0 %v1197_v45 }
  0x31   :  { %1092 = vmatpush3.bf16.msra.mxu1 %v1089_v62 }
  0x32   :  { %1094 = vmatprep.subr.bf16.mxu1 %v1093_v1 }
  0x33   :  { %958 = vmatpush3.bf16.msra.mxu0 %v1198_v46 }
  0x34   :  { %959 = vmatprep.subr.bf16.mxu0 %v1199_v47 }
  0x35   :  { %1096 = vmatpush3.bf16.msra.mxu1 %v1093_v1 }
  0x36   :  { %1098 = vmatprep.subr.bf16.mxu1 %v1097_v4 }
  0x37   :  { %960 = vmatpush3.bf16.msra.mxu0 %v1200_v51 }
  0x38   :  { %961 = vmatprep.subr.bf16.mxu0 %v1201_v52 }
  0x39   :  { %1100 = vmatpush3.bf16.msra.mxu1 %v1097_v4 }
  0x3a   :  { %1102 = vmatprep.subr.bf16.mxu1 %v1101_v7 }
  0x3b   :  { %962 = vmatpush3.bf16.msra.mxu0 %v1202_v53 }
  0x3c   :  { %963 = vmatprep.subr.bf16.mxu0 %v1203_v54 }
  0x3d   :  { %1104 = vmatpush3.bf16.msra.mxu1 %v1101_v7 }
  0x3e   :  { %1106 = vmatprep.subr.bf16.mxu1 %v1105_v10 }
  0x3f   :  { %964 = vmatpush3.bf16.msra.mxu0 %v1204_v55 }
  0x40   :  { %1118 = vmatprep.subr.bf16.mxu0 %v1085_v60 }
  0x41   :  { %1108 = vmatpush3.bf16.msra.mxu1 %v1105_v10 }
  0x42   :  { %577 = vmatmul.mubr.bf16.vlgmr.msra.gmra.mrb[4].mxu0 %v1206_v56  ;;  %1110 = vmatprep.subr.bf16.mxu1 %v1109_v13 }
  0x43   :  { %1120 = vmatpush3.bf16.msra.mxu0 %v1085_v60 }
  0x44   :  { %1122 = vmatprep.subr.bf16.mxu0 %v1089_v62 }
  0x45   :  { %1112 = vmatpush3.bf16.msra.mxu1 %v1109_v13 }
  0x46   :  { %1114 = vmatprep.subr.bf16.mxu1 %v1113_v16 }
  0x47   :  { %1124 = vmatpush3.bf16.msra.mxu0 %v1089_v62  ;;  %v894_v62 = vld [vmem:[%s1472_s3 + $0x1] ss:$0 sm:$0xff] }
  0x48   :  { %1126 = vmatprep.subr.bf16.mxu0 %v1093_v1 }
  0x49   :  { %1116 = vmatpush3.bf16.msra.mxu1 %v1113_v16 }
  0x4b   :  { %1128 = vmatpush3.bf16.msra.mxu0 %v1093_v1 }
  0x4c   :  { %1130 = vmatprep.subr.bf16.mxu0 %v1097_v4 }
  0x4f   :  { %1132 = vmatpush3.bf16.msra.mxu0 %v1097_v4 }
  0x50   :  { %1134 = vmatprep.subr.bf16.mxu0 %v1101_v7 }
  0x53   :  { %1136 = vmatpush3.bf16.msra.mxu0 %v1101_v7 }
  0x54   :  { %1138 = vmatprep.subr.bf16.mxu0 %v1105_v10 }
  0x57   :  { %1140 = vmatpush3.bf16.msra.mxu0 %v1105_v10 }
  0x58   :  { %1142 = vmatprep.subr.bf16.mxu0 %v1109_v13 }
  0x5b   :  { %1144 = vmatpush3.bf16.msra.mxu0 %v1109_v13 }
  0x5c   :  { %1146 = vmatprep.subr.bf16.mxu0 %v1113_v16 }
  0x5f   :  { %1148 = vmatpush3.bf16.msra.mxu0 %v1113_v16 }
  0xf5   :  { %v921_v17 = vpop.f32.mrb[0].mxu0 }
  0xf6   :  { %v922_v19 = vpop.f32.mrb[1].mxu0 }
  0xf7   :  { %v923_v20 = vadd.f32 %v922_v19, %v921_v17  ;;  %v924_v21 = vpop.f32.mrb[2].mxu0  ;;  %v943_v22 = vpop.f32.mrb[0].mxu1 }
  0xf8   :  { %v925_v23 = vpop.f32.mrb[3].mxu0  ;;  %v944_v26 = vpop.f32.mrb[1].mxu1 }
  0xf9   :  { %v497_v24 = vadd.f32 %v923_v20, %v836_v18  ;;  %v926_v25 = vadd.f32 %v925_v23, %v924_v21  ;;  %v945_v27 = vadd.f32 %v944_v26, %v943_v22  ;;  %v946_v28 = vpop.f32.mrb[2].mxu1 }
  0xfa   :  { %v947_v30 = vpop.f32.mrb[3].mxu1 }
  0xfb   :  { %v500_v29 = vadd.f32 %v926_v25, %v836_v18  ;;  %v538_v31 = vadd.f32 %v945_v27, %v497_v24  ;;  %v948_v32 = vadd.f32 %v947_v30, %v946_v28 }
  0xfd   :  { %v541_v33 = vadd.f32 %v948_v32, %v500_v29 }
  0xff   :  { %v619_v34 = vpop.f32.mrb[4].mxu1 }
 0x100   :  { %v1013_v35 = vpop.f32.mrb[5].mxu1 }
 0x101   :  { %v622_v36 = vpop.f32.mrb[6].mxu1 }
 0x102   :  { %v1014_v37 = vpop.f32.mrb[7].mxu1 }
 0x115   :  { %v965_v38 = vpop.f32.mrb[4].mxu0 }
 0x116   :  { %v966_v39 = vpop.f32.mrb[5].mxu0 }
 0x117   :  { %v967_v40 = vadd.f32 %v966_v39, %v965_v38  ;;  %v968_v41 = vpop.f32.mrb[6].mxu0 }
 0x118   :  { %v969_v42 = vpop.f32.mrb[7].mxu0 }
 0x119   :  { %v579_v43 = vadd.f32 %v967_v40, %v538_v31  ;;  %v970_v44 = vadd.f32 %v969_v42, %v968_v41 }
 0x11b   :  { %v620_v45 = vadd.f32 %v619_v34, %v579_v43  ;;  %v582_v46 = vadd.f32 %v970_v44, %v541_v33 }
 0x11d   :  { %v623_v47 = vadd.f32 %v622_v36, %v582_v46  ;;  %1047 = vmatprep.mubr.f32.mxu1 %v620_v45  ;;  %v717_v48 = vmul.f32 %v620_v45, %v620_v45 }
 0x11f   :  { %v718_v49 = vmul.f32 %v623_v47, %v623_v47  ;;  %1048 = vmatmul.mubr.f32.vlgmr.msra.gmra.mrb[8].mxu1 %v623_v47  ;;  %1082 = vmatprep.mubr.f32.mxu0 %v717_v48 }
 0x121   :  { %1083 = vmatmul.mubr.f32.vlgmr.msra.gmra.mrb[8].mxu0 %v718_v49 }
 0x1f2   :  { %v1049_v50 = vpop.f32.mrb[8].mxu1 }
 0x1f3   :  { %v795_v51 = vmul.f32 %v1049_v50, %v1049_v50  ;;  %v708_v52 = vpop.f32.mrb[9].mxu1  ;;  %v812_v1 = vsub.f32 %v623_v47, %v1049_v50 }
 0x1f4   :  { %v794_v53 = vmul.f32 %v708_v52, %v708_v52  ;;  %v1084_v54 = vpop.f32.mrb[8].mxu0  ;;  %v811_v4 = vsub.f32 %v620_v45, %v708_v52 }
 0x1f5   :  { %v797_v55 = vsub.f32 %v1084_v54, %v795_v51  ;;  %v785_v56 = vpop.f32.mrb[9].mxu0 }
 0x1f6   :  { %v796_v57 = vsub.f32 %v785_v56, %v794_v53 }
 0x1f7   :  { %v799_v58 = vmax.f32 %v797_v55, 0.0 }
 0x1f8   :  { %v798_v59 = vmax.f32 %v796_v57, 0.0 }
 0x1f9   :  { %v801_v60 = vadd.f32 1e-05, %v799_v58 }
 0x1fa   :  { %v800_v61 = vadd.f32 1e-05, %v798_v59 }
 0x1fb   :  { %1210 = vrsqrt.f32 %v801_v60 }
 0x1fc   :  { %1212 = vrsqrt.f32 %v800_v61 }
 0x205   :  { %v1211_v63 = vpop.eup %1210 }
 0x206   :  { %v1213_v0 = vpop.eup %1212  ;;  %v810_v2 = vmul.f32 %v1211_v63, %v894_v62 }
 0x207   :  { %v809_v5 = vmul.f32 %v1213_v0, %v894_v62 }
 0x208   :  { %v814_v6 = vmul.f32 %v812_v1, %v810_v2 }
 0x209   :  { %v813_v7 = vmul.f32 %v811_v4, %v809_v5 }
 0x20a   :  { %v821_v8 = vadd.f32 %v895_v3, %v814_v6 }
 0x20b   :  { %v820_v9 = vadd.f32 %v895_v3, %v813_v7 }
 0x20d   :  { %v903_v10 = vpack.c.bf16 %v821_v8, %v820_v9 }
 0x20f   :  { %904 = vst [vmem:[%s1473_s4] sm:$0xff] %v903_v10  }

</bundles_post_ra>
